<compile_context>
chip_gen: v7x
topology: tpu7x:2x2x1
jax: 0.10.0
libtpu: 0.0.40
codegen_flags: <defaults>
</compile_context>

<pallas_src>
import functools
import math

import jax
import jax.numpy as jnp
from jax.experimental import pallas as pl
from jax.experimental.pallas import tpu as pltpu


def _round_up(x, m):
    return (x + m - 1) // m * m


def _img2patch(x, p_h, p_w):
    """einops: 'b c (p h) (q w) -> b (p q) (h w c)' with h=p_h, w=p_w."""
    B, C, H, W = x.shape
    assert H % p_h == 0 and W % p_w == 0
    p, q = H // p_h, W // p_w
    # (B, C, p, h, q, w) -> (B, p, q, h, w, C) -> (B, p*q, h*w*C)
    x = x.reshape(B, C, p, p_h, q, p_w)
    x = jnp.transpose(x, (0, 2, 4, 3, 5, 1))
    return x.reshape(B, p * q, p_h * p_w * C)


def _linear_kernel(x_ref, w_ref, b_ref, o_ref):
    # x_ref: (TM, Kp) bf16   w_ref: (Kp, Np) bf16
    # b_ref: (1, Np) f32     o_ref: (TM, Np) out_dtype
    acc = jnp.dot(x_ref[...], w_ref[...], preferred_element_type=jnp.float32)
    o_ref[...] = (acc + b_ref[...]).astype(o_ref.dtype)


_FALLBACK_VMEM_CAPACITY = 64 * 1024 * 1024  # v7x per-TC size (most restrictive)


def _vmem_capacity_bytes():
    try:
        return int(pltpu.get_tpu_info().vmem_capacity_bytes)
    except Exception:  # CPU emulation / older runtimes: be conservative.
        return _FALLBACK_VMEM_CAPACITY


def _tile_bytes(tm, k_pad, n_pad, out_bytes):
    # Pallas double-buffers every operand by default; the constant index_map
    # on the weight/bias only avoids re-fetching, not the second buffer.
    return (2 * tm * k_pad * 2            # x tile, bf16
            + 2 * k_pad * n_pad * 2       # weight, bf16 (VMEM-resident)
            + 2 * n_pad * 4               # bias, f32
            + 2 * tm * n_pad * out_bytes  # out tile
            )


def _choose_m_tiling(M, k_pad, n_pad, out_bytes, budget):
    """Return (M_pad, TM): minimal padding, VMEM-fitting, 2-TC-friendly grid."""
    if M <= 128:
        m_pad = _round_up(M, 16)   # single tile (block == full dim)
        return m_pad, m_pad
    m_pad = _round_up(M, 128)      # waste <= 127 rows; slice is ~free
    fitting = [t for t in (1024, 512, 256, 128)
               if m_pad % t == 0
               and _tile_bytes(t, k_pad, n_pad, out_bytes) <= budget]
    if not fitting:
        # Weight alone busts the budget; fall back and rely on vmem_limit.
        return m_pad, 128
    for t in fitting:              # descending: biggest tile with a balanced
        g = m_pad // t             # grid (even, or long enough that a 1-step
        if g % 2 == 0 or g >= 8:   # imbalance is <= ~12%) for v7x megacore.
            return m_pad, t
    return m_pad, fitting[0]


def _pallas_linear(x2d, weight, bias, out_dtype):
    """x2d: (M, K), weight: (K, N) f32, bias: (N,) f32 -> (M, N) out_dtype."""
    M, K = x2d.shape
    _, N = weight.shape

    k_pad = _round_up(K, 128)
    n_pad = _round_up(N, 128)
    out_bytes = jnp.dtype(out_dtype).itemsize

    cap = _vmem_capacity_bytes()
    budget = min(cap // 3, 28 * 1024 * 1024)          # tile working set
    vmem_limit = min(cap // 2, 64 * 1024 * 1024)      # scoped-VMEM ceiling
    m_pad, tm = _choose_m_tiling(M, k_pad, n_pad, out_bytes, budget)

    # bf16 inputs (half the HBM traffic, native MXU); f32 bias.
    x_p = jnp.pad(x2d.astype(jnp.bfloat16), ((0, m_pad - M), (0, k_pad - K)))
    w_p = jnp.pad(weight.astype(jnp.bfloat16), ((0, k_pad - K), (0, n_pad - N)))
    b_p = jnp.pad(bias.astype(jnp.float32), (0, n_pad - N)).reshape(1, n_pad)

    grid_m = m_pad // tm

    cost = pl.CostEstimate(
        flops=2 * m_pad * k_pad * n_pad,
        transcendentals=0,
        bytes_accessed=(m_pad * k_pad * 2 + k_pad * n_pad * 2 + n_pad * 4
                        + m_pad * n_pad * out_bytes),
    )

    out = pl.pallas_call(
        _linear_kernel,
        out_shape=jax.ShapeDtypeStruct((m_pad, n_pad), out_dtype),
        grid_spec=pltpu.PrefetchScalarGridSpec(
            num_scalar_prefetch=0,
            grid=(grid_m,),
            in_specs=[
                pl.BlockSpec((tm, k_pad), lambda i: (i, 0)),     # X, streamed
                pl.BlockSpec((k_pad, n_pad), lambda i: (0, 0)),  # W, resident
                pl.BlockSpec((1, n_pad), lambda i: (0, 0)),      # bias
            ],
            out_specs=pl.BlockSpec((tm, n_pad), lambda i: (i, 0)),
        ),
        compiler_params=pltpu.CompilerParams(
            dimension_semantics=("parallel",),   # shard M tiles across TCs
            vmem_limit_bytes=vmem_limit,
        ),
        cost_estimate=cost,
    )(x_p, w_p, b_p)

    if m_pad == M and n_pad == N:
        return out
    return out[:M, :N]


@functools.partial(jax.jit, static_argnames=("p_h", "p_w", "out_dtype"))
def _patch_embed_forward(x, weight, bias, *, p_h, p_w, out_dtype):
    # Cast before the rearrange: the XLA pre-pass reads f32 once and writes
    # bf16 once (fused transpose+convert+pad), the kernel then reads bf16.
    patches = _img2patch(x.astype(jnp.bfloat16), p_h, p_w)     # (B, P, K)
    b, p_cnt, k = patches.shape
    flat = patches.reshape(b * p_cnt, k)
    out = _pallas_linear(flat, weight, bias, out_dtype)        # (B*P, N)
    return out.reshape(b, p_cnt, weight.shape[1])


class BasicLinearProjection:
    """JAX/Pallas port of the PyTorch BasicLinearProjection (forward only)."""

    def __init__(self, d_model=512, patch_size=(16, 16), in_channel=3,
                 key=None, out_dtype=jnp.bfloat16):
        p_h, p_w = (patch_size if isinstance(patch_size, tuple)
                    else (patch_size, patch_size))
        self.p_h, self.p_w = p_h, p_w
        self.d_model = d_model
        self.out_dtype = out_dtype
        in_features = p_h * p_w * in_channel
        if key is None:
            key = jax.random.PRNGKey(0)
        k_w, k_b = jax.random.split(key)
        # Deterministic init mimicking nn.Linear's uniform(-1/sqrt(fan_in), .).
        bound = 1.0 / math.sqrt(in_features)
        # Stored transposed to (in_features, d_model); rows in the module's
        # (h, w, c) feature order so that patches @ weight + bias matches.
        self.weight = jax.random.uniform(
            k_w, (in_features, d_model), jnp.float32, -bound, bound)
        self.bias = jax.random.uniform(
            k_b, (d_model,), jnp.float32, -bound, bound)

    def __call__(self, x):
        # Weights are traced jit arguments (not baked constants), so updating
        # self.weight / self.bias is reflected on the next call.
        return _patch_embed_forward(
            x, self.weight, self.bias,
            p_h=self.p_h, p_w=self.p_w, out_dtype=self.out_dtype)


if __name__ == "__main__":
    # Small shapes: batch=2, channels=4, spatial=16x16, patch=8x8, d_model=32.
    key = jax.random.PRNGKey(0)
    k_x, k_p = jax.random.split(key)
    B, C, H, W = 2, 4, 16, 16
    x = jax.random.normal(k_x, (B, C, H, W), jnp.float32)

    mod = BasicLinearProjection(d_model=32, patch_size=(8, 8), in_channel=C,
                                key=k_p, out_dtype=jnp.bfloat16)
    out = jax.block_until_ready(mod(x))

    # Pure-JAX f32 reference.  The kernel uses bf16 inputs (f32 accumulation)
    # and a bf16 output, so the error is ~2^-8 relative; tolerance scales
    # mildly with K for larger patch/channel combos.
    K_feat = mod.weight.shape[0]
    tol = max(3e-2, 1e-3 * math.sqrt(K_feat))
    ref = _img2patch(x, 8, 8) @ mod.weight + mod.bias
    assert out.shape == (B, (H // 8) * (W // 8), 32), out.shape
    assert out.dtype == jnp.bfloat16, out.dtype
    err = jnp.max(jnp.abs(out.astype(jnp.float32) - ref))
    assert jnp.allclose(out.astype(jnp.float32), ref, atol=tol, rtol=tol), (
        float(err))
    print("KERNEL_OK")
</pallas_src>

<mosaic_0001>
module attributes {stable_mosaic.version = 11 : i64} {
  func.func @_linear_kernel(%arg0: i32, %arg1: memref<16x256xbf16, #tpu.memory_space<vmem>>, %arg2: memref<256x128xbf16, #tpu.memory_space<vmem>>, %arg3: memref<1x128xf32, #tpu.memory_space<vmem>>, %arg4: memref<16x128xbf16, #tpu.memory_space<vmem>>) attributes {dimension_semantics = [#tpu.dimension_semantics<parallel>], iteration_bounds = array<i64: 1>, scalar_prefetch = 0 : i64, scratch_operands = 0 : i64, tpu.core_type = #tpu.core_type<tc>, window_params = [{transform_indices = @transform_0, window_bounds = array<i64: 16, 256>}, {pipeline_mode = #tpu.pipeline_mode<synchronous>, transform_indices = @transform_1, window_bounds = array<i64: 256, 128>}, {pipeline_mode = #tpu.pipeline_mode<synchronous>, transform_indices = @transform_2, window_bounds = array<i64: 1, 128>}, {transform_indices = @transform_3, window_bounds = array<i64: 16, 128>}]} {
    %c0 = arith.constant 0 : index
    %c0_0 = arith.constant 0 : index
    %0 = vector.load %arg1[%c0, %c0_0] : memref<16x256xbf16, #tpu.memory_space<vmem>>, vector<16x256xbf16>
    %c0_1 = arith.constant 0 : index
    %c0_2 = arith.constant 0 : index
    %1 = vector.load %arg2[%c0_1, %c0_2] : memref<256x128xbf16, #tpu.memory_space<vmem>>, vector<256x128xbf16>
    %cst = arith.constant dense<0.000000e+00> : vector<16x128xf32>
    %2 = tpu.matmul %0, %1, %cst {dimension_numbers = #tpu.dot_dimension_numbers<[1], [0], [0], [1], [0, 0, 1, 1], [], []>} : vector<16x256xbf16>, vector<256x128xbf16>, vector<16x128xf32> -> vector<16x128xf32>
    %c0_3 = arith.constant 0 : index
    %c0_4 = arith.constant 0 : index
    %3 = vector.load %arg3[%c0_3, %c0_4] : memref<1x128xf32, #tpu.memory_space<vmem>>, vector<1x128xf32>
    %4 = vector.broadcast %3 : vector<1x128xf32> to vector<16x128xf32>
    %5 = arith.addf %2, %4 : vector<16x128xf32>
    %6 = arith.truncf %5 : vector<16x128xf32> to vector<16x128xbf16>
    %c0_5 = arith.constant 0 : index
    %c0_6 = arith.constant 0 : index
    %7 = vector.load %arg4[%c0_5, %c0_6] : memref<16x128xbf16, #tpu.memory_space<vmem>>, vector<16x128xbf16>
    tpu.vector_store %arg4[%c0_5, %c0_6], %6 {strides = array<i32>} : memref<16x128xbf16, #tpu.memory_space<vmem>>, vector<16x128xbf16>,
    return
  }
  func.func @transform_0(%arg0: i32) -> (i32, i32) {
    %c0_i32 = arith.constant 0 : i32
    %c0_i32_0 = arith.constant 0 : i32
    return %arg0, %c0_i32 : i32, i32
  }
  func.func @transform_1(%arg0: i32) -> (i32, i32) {
    %c0_i32 = arith.constant 0 : i32
    %c0_i32_0 = arith.constant 0 : i32
    %c0_i32_1 = arith.constant 0 : i32
    return %c0_i32, %c0_i32_0 : i32, i32
  }
  func.func @transform_2(%arg0: i32) -> (i32, i32) {
    %c0_i32 = arith.constant 0 : i32
    %c0_i32_0 = arith.constant 0 : i32
    %c0_i32_1 = arith.constant 0 : i32
    return %c0_i32, %c0_i32_0 : i32, i32
  }
  func.func @transform_3(%arg0: i32) -> (i32, i32) {
    %c0_i32 = arith.constant 0 : i32
    %c0_i32_0 = arith.constant 0 : i32
    return %arg0, %c0_i32 : i32, i32
  }
}

</mosaic_0001>

<bundles_post_ra>
// kernel: _patch_embed_forward.1
= control target key start
LH: loop header
LB: loop body
LE: loop exit
PB: predicated region body
PF: predicated region fallthrough
CT: control target
= control target key end

     0   :  { %s366_s1 = inlined_call_operand.vmem [shape: bf16[256,128], index: 1, kind: input, shape index: {}]   ;;  %s367_s0 = inlined_call_operand.vmem [shape: bf16[16,256], index: 0, kind: input, shape index: {}]   ;;  %s368_s2 = inlined_call_operand.vmem [shape: f32[1,128], index: 2, kind: input, shape index: {}]   ;;  %s369_s3 = inlined_call_operand.vmem [shape: bf16[16,128], index: 3, kind: output, shape index: {}]  }
   0x1   :  { %v267_v0 = vld [vmem:[%s366_s1 + $0x40] sm:$0xff]   ;;  %v269_v2 = vld [vmem:[%s366_s1 + $0x48] sm:$0xff]   ;;  %v271_v4 = vld [vmem:[%s366_s1 + $0x50] sm:$0xff]  }
   0x2   :  { %v268_v1 = vld [vmem:[%s366_s1] sm:$0xff]   ;;  %245 = vmatprep.subr.bf16.mxu0 %v267_v0  ;;  %v270_v3 = vld [vmem:[%s366_s1 + $0x8] sm:$0xff]   ;;  %v272_v5 = vld [vmem:[%s366_s1 + $0x10] sm:$0xff]  }
   0x3   :  { %246 = vmatpush3.bf16.msra.mxu0 %v268_v1  ;;  %v273_v6 = vld [vmem:[%s366_s1 + $0x58] sm:$0xff]   ;;  %v275_v8 = vld [vmem:[%s366_s1 + $0x60] sm:$0xff]   ;;  %v277_v10 = vld [vmem:[%s366_s1 + $0x68] sm:$0xff]  }
   0x4   :  { %247 = vmatprep.subr.bf16.mxu0 %v269_v2  ;;  %v274_v7 = vld [vmem:[%s366_s1 + $0x18] sm:$0xff]   ;;  %v276_v9 = vld [vmem:[%s366_s1 + $0x20] sm:$0xff]   ;;  %v278_v12 = vld [vmem:[%s366_s1 + $0x28] sm:$0xff]  }
   0x5   :  { %v285_v11 = vld [vmem:[%s367_s0 + $0x4] ss:$8 sps:$4 sm:$0xff]   ;;  %v279_v13 = vld [vmem:[%s366_s1 + $0x70] sm:$0xff]   ;;  %v281_v15 = vld [vmem:[%s366_s1 + $0x78] sm:$0xff]  }
   0x6   :  { %194 = vmatprep.mubr.bf16.mxu0 %v285_v11  ;;  %v280_v14 = vld [vmem:[%s366_s1 + $0x30] sm:$0xff]   ;;  %v282_v16 = vld [vmem:[%s366_s1 + $0x38] sm:$0xff]   ;;  %v283_v17 = vld [vmem:[%s367_s0] ss:$8 sps:$4 sm:$0xff]  }
   0x7   :  { %248 = vmatpush3.bf16.msra.mxu0 %v270_v3  ;;  %v217_v22 = vld [vmem:[%s368_s2] ss:$0 sm:$0xff] }
   0x8   :  { %249 = vmatprep.subr.bf16.mxu0 %v271_v4 }
   0xb   :  { %250 = vmatpush3.bf16.msra.mxu0 %v272_v5 }
   0xc   :  { %251 = vmatprep.subr.bf16.mxu0 %v273_v6 }
   0xf   :  { %252 = vmatpush3.bf16.msra.mxu0 %v274_v7 }
  0x10   :  { %253 = vmatprep.subr.bf16.mxu0 %v275_v8 }
  0x13   :  { %254 = vmatpush3.bf16.msra.mxu0 %v276_v9 }
  0x14   :  { %255 = vmatprep.subr.bf16.mxu0 %v277_v10 }
  0x17   :  { %256 = vmatpush3.bf16.msra.mxu0 %v278_v12 }
  0x18   :  { %257 = vmatprep.subr.bf16.mxu0 %v279_v13 }
  0x1b   :  { %258 = vmatpush3.bf16.msra.mxu0 %v280_v14 }
  0x1c   :  { %259 = vmatprep.subr.bf16.mxu0 %v281_v15 }
  0x1f   :  { %260 = vmatpush3.bf16.msra.mxu0 %v282_v16 }
  0x22   :  { %195 = vmatmul.mubr.bf16.vlgmr.msra.gmra.mrb[0].mxu0 %v283_v17 }
  0xf5   :  { %v261_v18 = vpop.f32.mrb[0].mxu0 }
  0xf6   :  { %v262_v19 = vpop.f32.mrb[1].mxu0 }
  0xf7   :  { %v263_v20 = vadd.f32 %v262_v19, %v261_v18  ;;  %v264_v21 = vpop.f32.mrb[2].mxu0 }
  0xf8   :  { %v265_v23 = vpop.f32.mrb[3].mxu0 }
  0xf9   :  { %v266_v24 = vadd.f32 %v265_v23, %v264_v21  ;;  %v197_v25 = vadd.f32 %v263_v20, %v217_v22 }
  0xfb   :  { %v200_v26 = vadd.f32 %v266_v24, %v217_v22 }
  0xfd   :  { %v243_v27 = vpack.c.bf16 %v200_v26, %v197_v25 }
  0xff   :  { %244 = vst [vmem:[%s369_s3] sm:$0xff] %v243_v27  }

</bundles_post_ra>
